<compile_context>
chip_gen: v7x
topology: tpu7x:2x2x1
jax: 0.10.0
libtpu: 0.0.40
codegen_flags: <defaults>
</compile_context>

<pallas_src>
import functools

import jax
import jax.numpy as jnp
from jax import lax
from jax.experimental import pallas as pl
from jax.experimental.pallas import tpu as pltpu


def _gfe_kernel(patches_ref, w2_ref, cb_ref, fcw_ref, fcb_ref, o_ref, *, hw):
    # patches_ref: (9*Cin, bb*H*W)  im2col'd input (lane-dense), compute dtype
    # w2_ref:      (Cout, 9*Cin)    conv weight slab, compute dtype
    # cb_ref:      (Cout, 1)        conv bias, f32
    # fcw_ref:     (Cout, Cout)     fc weight (out, in), compute dtype
    # fcb_ref:     (Cout, 1)        fc bias, f32
    # o_ref:       (bb, Cout)       output rows for this batch block, f32
    bb = patches_ref.shape[1] // hw

    # 3x3 conv == a single MXU matmul over the im2col'd taps (K = 9*Cin).
    acc = jnp.dot(w2_ref[...], patches_ref[...],
                  preferred_element_type=jnp.float32)       # (Cout, bb*HW) f32
    acc = jnp.maximum(acc + cb_ref[...], 0.0)               # bias + ReLU (f32)

    # AdaptiveAvgPool2d((1,1)): lane-axis sum over each batch element's
    # contiguous H*W segment (segment offsets are multiples of 128).
    sums = [jnp.sum(acc[:, i * hw:(i + 1) * hw], axis=-1, keepdims=True)
            for i in range(bb)]                             # bb x (Cout, 1)
    pooled = sums[0] if bb == 1 else jnp.concatenate(sums, axis=-1)
    pooled = pooled * (1.0 / hw)                            # (Cout, bb) f32

    # fc + ReLU, batched over the bb pooled columns (single small matmul).
    y = jnp.dot(fcw_ref[...], pooled.astype(fcw_ref.dtype),
                preferred_element_type=jnp.float32) + fcb_ref[...]  # (Cout, bb)
    o_ref[...] = jnp.transpose(jnp.maximum(y, 0.0)).astype(o_ref.dtype)


def _default_batch_block(batch):
    """Whole batch per grid step on single-TC chips (v5e/v6e); keep a >=2-wide
    'parallel' grid axis on dual-TensorCore chips (v7x)."""
    try:
        kind = jax.devices()[0].device_kind.lower()
    except Exception:
        return batch
    if batch >= 2 and ("v7" in kind or "7x" in kind):
        return max(1, batch // 2)
    return batch


def global_feature_extractor(x_nchw, conv_w, conv_b, fc_w, fc_b,
                             *, compute_dtype=jnp.bfloat16, batch_block=None):
    """x_nchw: (B, Cin, H, W); conv_w: (Cout, Cin, 3, 3); conv_b: (Cout,);
    fc_w: (Cout, Cout); fc_b: (Cout,). Returns (B, Cout) float32."""
    B, Cin, H, W = x_nchw.shape
    Cout = conv_w.shape[0]
    HW = H * W

    if batch_block is None:
        batch_block = _default_batch_block(B)
    if batch_block < 1 or B % batch_block != 0:
        batch_block = 1
    grid_b = B // batch_block

    # ---- wrapper-side im2col (the 9 shifted copies happen once, in XLA) ----
    xf = x_nchw.astype(jnp.float32)
    x_pad = jnp.pad(xf, ((0, 0), (0, 0), (1, 1), (1, 1)))     # (B,Cin,H+2,W+2)
    taps = [x_pad[:, :, ky:ky + H, kx:kx + W]                  # (B,Cin,H,W)
            for ky in range(3) for kx in range(3)]
    patches = jnp.stack(taps, axis=1)                          # (B,9,Cin,H,W)
    # -> (9*Cin, B*H*W): contraction dim on sublanes, big B*H*W dim lane-dense.
    patches = jnp.transpose(patches, (1, 2, 0, 3, 4)).reshape(9 * Cin, B * HW)
    patches = patches.astype(compute_dtype)

    # conv weight (Cout,Cin,3,3) -> (Cout, 9*Cin), matching the (tap, cin)
    # row ordering of `patches`.
    w2 = jnp.transpose(conv_w, (0, 2, 3, 1)).reshape(Cout, 9 * Cin)
    w2 = w2.astype(compute_dtype)
    cb = conv_b.reshape(Cout, 1).astype(jnp.float32)
    fcw = fc_w.astype(compute_dtype)                           # (out, in)
    fcb = fc_b.reshape(Cout, 1).astype(jnp.float32)

    kernel = functools.partial(_gfe_kernel, hw=HW)
    # TODO(synk): for much larger H*W / Cin, add an "arbitrary" spatial-tile
    # grid axis with a running pooled-sum accumulator so VMEM stays flat
    # (v7x has only 64 MiB physical VMEM).
    return pl.pallas_call(
        kernel,
        out_shape=jax.ShapeDtypeStruct((B, Cout), jnp.float32),
        grid_spec=pltpu.PrefetchScalarGridSpec(
            num_scalar_prefetch=0,
            grid=(grid_b,),
            in_specs=[
                pl.BlockSpec((9 * Cin, batch_block * HW), lambda b: (0, b)),
                pl.BlockSpec((Cout, 9 * Cin), lambda b: (0, 0)),
                pl.BlockSpec((Cout, 1), lambda b: (0, 0)),
                pl.BlockSpec((Cout, Cout), lambda b: (0, 0)),
                pl.BlockSpec((Cout, 1), lambda b: (0, 0)),
            ],
            out_specs=pl.BlockSpec((batch_block, Cout), lambda b: (b, 0)),
        ),
        compiler_params=pltpu.CompilerParams(
            dimension_semantics=("parallel",)),
    )(patches, w2, cb, fcw, fcb)


def _reference(x_nchw, conv_w, conv_b, fc_w, fc_b):
    y = lax.conv_general_dilated(
        x_nchw.astype(jnp.float32), conv_w.astype(jnp.float32),
        window_strides=(1, 1), padding=((1, 1), (1, 1)),
        dimension_numbers=("NCHW", "OIHW", "NCHW"))
    y = jax.nn.relu(y + conv_b[None, :, None, None])
    pooled = jnp.mean(y, axis=(2, 3))                          # (B, Cout)
    return jax.nn.relu(pooled @ fc_w.T + fc_b[None, :])


if __name__ == "__main__":
    B, Cin, H, W = 2, 4, 16, 16
    num_hidden = 32

    key = jax.random.PRNGKey(0)
    k_x, k_cw, k_cb, k_fw, k_fb = jax.random.split(key, 5)

    x = jax.random.normal(k_x, (B, Cin, H, W), jnp.float32)
    # Deterministic, PyTorch-like uniform init (synthetic weights).
    bound_c = 1.0 / (Cin * 3 * 3) ** 0.5
    conv_w = jax.random.uniform(k_cw, (num_hidden, Cin, 3, 3), jnp.float32,
                                -bound_c, bound_c)
    conv_b = jax.random.uniform(k_cb, (num_hidden,), jnp.float32,
                                -bound_c, bound_c)
    bound_f = 1.0 / num_hidden ** 0.5
    fc_w = jax.random.uniform(k_fw, (num_hidden, num_hidden), jnp.float32,
                              -bound_f, bound_f)
    fc_b = jax.random.uniform(k_fb, (num_hidden,), jnp.float32,
                              -bound_f, bound_f)

    ref = _reference(x, conv_w, conv_b, fc_w, fc_b)

    # Exact path (f32 operands): must match the XLA reference tightly.
    out_f32 = jax.block_until_ready(global_feature_extractor(
        x, conv_w, conv_b, fc_w, fc_b, compute_dtype=jnp.float32))
    assert out_f32.shape == (B, num_hidden)
    assert jnp.allclose(out_f32, ref, atol=1e-4, rtol=1e-4), (
        float(jnp.max(jnp.abs(out_f32 - ref))))

    # Fast path (bf16 matmul operands, f32 accumulation): bf16-level tolerance.
    out_bf16 = jax.block_until_ready(global_feature_extractor(
        x, conv_w, conv_b, fc_w, fc_b))
    assert out_bf16.shape == (B, num_hidden)
    assert jnp.allclose(out_bf16, ref, atol=2e-2, rtol=2e-2), (
        float(jnp.max(jnp.abs(out_bf16 - ref))))

    print("KERNEL_OK")
</pallas_src>

<mosaic_0001>
module attributes {stable_mosaic.version = 11 : i64} {
  func.func @_gfe_kernel(%arg0: i32, %arg1: memref<36x512xf32, #tpu.memory_space<vmem>>, %arg2: memref<32x36xf32, #tpu.memory_space<vmem>>, %arg3: memref<32x1xf32, #tpu.memory_space<vmem>>, %arg4: memref<32x32xf32, #tpu.memory_space<vmem>>, %arg5: memref<32x1xf32, #tpu.memory_space<vmem>>, %arg6: memref<2x32xf32, #tpu.memory_space<vmem>>) attributes {dimension_semantics = [#tpu.dimension_semantics<parallel>], iteration_bounds = array<i64: 1>, scalar_prefetch = 0 : i64, scratch_operands = 0 : i64, tpu.core_type = #tpu.core_type<tc>, window_params = [{transform_indices = @transform_0, window_bounds = array<i64: 36, 512>}, {pipeline_mode = #tpu.pipeline_mode<synchronous>, transform_indices = @transform_1, window_bounds = array<i64: 32, 36>}, {pipeline_mode = #tpu.pipeline_mode<synchronous>, transform_indices = @transform_2, window_bounds = array<i64: 32, 1>}, {pipeline_mode = #tpu.pipeline_mode<synchronous>, transform_indices = @transform_3, window_bounds = array<i64: 32, 32>}, {pipeline_mode = #tpu.pipeline_mode<synchronous>, transform_indices = @transform_4, window_bounds = array<i64: 32, 1>}, {transform_indices = @transform_5, window_bounds = array<i64: 2, 32>}]} {
    %c0 = arith.constant 0 : index
    %c0_0 = arith.constant 0 : index
    %0 = vector.load %arg2[%c0, %c0_0] : memref<32x36xf32, #tpu.memory_space<vmem>>, vector<32x36xf32>
    %c0_1 = arith.constant 0 : index
    %c0_2 = arith.constant 0 : index
    %1 = vector.load %arg1[%c0_1, %c0_2] : memref<36x512xf32, #tpu.memory_space<vmem>>, vector<36x512xf32>
    %cst = arith.constant dense<0.000000e+00> : vector<32x512xf32>
    %2 = tpu.matmul %0, %1, %cst {dimension_numbers = #tpu.dot_dimension_numbers<[1], [0], [0], [1], [0, 0, 1, 1], [], []>} : vector<32x36xf32>, vector<36x512xf32>, vector<32x512xf32> -> vector<32x512xf32>
    %c0_3 = arith.constant 0 : index
    %c0_4 = arith.constant 0 : index
    %3 = vector.load %arg3[%c0_3, %c0_4] : memref<32x1xf32, #tpu.memory_space<vmem>>, vector<32x1xf32>
    %4 = vector.broadcast %3 : vector<32x1xf32> to vector<32x512xf32>
    %5 = arith.addf %2, %4 : vector<32x512xf32>
    %cst_5 = arith.constant 0.000000e+00 : f32
    %6 = vector.broadcast %cst_5 : f32 to vector<32x512xf32>
    %7 = arith.maximumf %5, %6 : vector<32x512xf32>
    %8 = vector.extract_strided_slice %7 {offsets = [0, 0], sizes = [32, 256], strides = [1, 1]} : vector<32x512xf32> to vector<32x256xf32>
    %cst_6 = arith.constant dense<0.000000e+00> : vector<32xf32>
    %9 = vector.multi_reduction <add>, %8, %cst_6 [1] : vector<32x256xf32> to vector<32xf32>
    %10 = vector.shape_cast %9 : vector<32xf32> to vector<32x1xf32>
    %11 = vector.extract_strided_slice %7 {offsets = [0, 256], sizes = [32, 256], strides = [1, 1]} : vector<32x512xf32> to vector<32x256xf32>
    %cst_7 = arith.constant dense<0.000000e+00> : vector<32xf32>
    %12 = vector.multi_reduction <add>, %11, %cst_7 [1] : vector<32x256xf32> to vector<32xf32>
    %13 = vector.shape_cast %12 : vector<32xf32> to vector<32x1xf32>
    %14 = tpu.concatenate %10, %13 in 1 : vector<32x1xf32>, vector<32x1xf32> -> vector<32x2xf32>
    %cst_8 = arith.constant 3.906250e-03 : f32
    %15 = vector.broadcast %cst_8 : f32 to vector<32x2xf32>
    %16 = arith.mulf %14, %15 : vector<32x2xf32>
    %c0_9 = arith.constant 0 : index
    %c0_10 = arith.constant 0 : index
    %17 = vector.load %arg4[%c0_9, %c0_10] : memref<32x32xf32, #tpu.memory_space<vmem>>, vector<32x32xf32>
    %cst_11 = arith.constant dense<0.000000e+00> : vector<32x2xf32>
    %18 = tpu.matmul %17, %16, %cst_11 {dimension_numbers = #tpu.dot_dimension_numbers<[1], [0], [0], [1], [0, 0, 1, 1], [], []>} : vector<32x32xf32>, vector<32x2xf32>, vector<32x2xf32> -> vector<32x2xf32>
    %c0_12 = arith.constant 0 : index
    %c0_13 = arith.constant 0 : index
    %19 = vector.load %arg5[%c0_12, %c0_13] : memref<32x1xf32, #tpu.memory_space<vmem>>, vector<32x1xf32>
    %20 = vector.broadcast %19 : vector<32x1xf32> to vector<32x2xf32>
    %21 = arith.addf %18, %20 : vector<32x2xf32>
    %cst_14 = arith.constant 0.000000e+00 : f32
    %22 = vector.broadcast %cst_14 : f32 to vector<32x2xf32>
    %23 = arith.maximumf %21, %22 : vector<32x2xf32>
    %24 = tpu.transpose %23, [1, 0] : vector<32x2xf32> -> vector<2x32xf32>
    %c0_15 = arith.constant 0 : index
    %c0_16 = arith.constant 0 : index
    %25 = vector.load %arg6[%c0_15, %c0_16] : memref<2x32xf32, #tpu.memory_space<vmem>>, vector<2x32xf32>
    tpu.vector_store %arg6[%c0_15, %c0_16], %24 {strides = array<i32>} : memref<2x32xf32, #tpu.memory_space<vmem>>, vector<2x32xf32>,
    return
  }
  func.func @transform_0(%arg0: i32) -> (i32, i32) {
    %c0_i32 = arith.constant 0 : i32
    %c0_i32_0 = arith.constant 0 : i32
    return %c0_i32, %arg0 : i32, i32
  }
  func.func @transform_1(%arg0: i32) -> (i32, i32) {
    %c0_i32 = arith.constant 0 : i32
    %c0_i32_0 = arith.constant 0 : i32
    %c0_i32_1 = arith.constant 0 : i32
    return %c0_i32, %c0_i32_0 : i32, i32
  }
  func.func @transform_2(%arg0: i32) -> (i32, i32) {
    %c0_i32 = arith.constant 0 : i32
    %c0_i32_0 = arith.constant 0 : i32
    %c0_i32_1 = arith.constant 0 : i32
    return %c0_i32, %c0_i32_0 : i32, i32
  }
  func.func @transform_3(%arg0: i32) -> (i32, i32) {
    %c0_i32 = arith.constant 0 : i32
    %c0_i32_0 = arith.constant 0 : i32
    %c0_i32_1 = arith.constant 0 : i32
    return %c0_i32, %c0_i32_0 : i32, i32
  }
  func.func @transform_4(%arg0: i32) -> (i32, i32) {
    %c0_i32 = arith.constant 0 : i32
    %c0_i32_0 = arith.constant 0 : i32
    %c0_i32_1 = arith.constant 0 : i32
    return %c0_i32, %c0_i32_0 : i32, i32
  }
  func.func @transform_5(%arg0: i32) -> (i32, i32) {
    %c0_i32 = arith.constant 0 : i32
    %c0_i32_0 = arith.constant 0 : i32
    return %arg0, %c0_i32 : i32, i32
  }
}

</mosaic_0001>

<bundles_post_ra>
// kernel: tpu_custom_call.1
= control target key start
LH: loop header
LB: loop body
LE: loop exit
PB: predicated region body
PF: predicated region fallthrough
CT: control target
= control target key end

     0   :  { %10 = vsyncpa [#allocation3], 0  ;;  %s773_s0 = inlined_call_operand.hbm [shape: f32[36,512], index: 0, kind: input, shape index: {}]   ;;  %s774_s1 = inlined_call_operand.vmem [shape: f32[32,36], index: 1, kind: input, shape index: {}]   ;;  %s775_s2 = inlined_call_operand.vmem [shape: f32[32,1], index: 2, kind: input, shape index: {}]   ;;  %s776_s3 = inlined_call_operand.vmem [shape: f32[32,32], index: 3, kind: input, shape index: {}]   ;;  %s777_s4 = inlined_call_operand.vmem [shape: f32[32,1], index: 4, kind: input, shape index: {}]   ;;  %s778_s5 = inlined_call_operand.hbm [shape: f32[2,32], index: 5, kind: output, shape index: {}]  }
   0x1   :  { %11 = vsyncpa [#allocation4], 0  ;;  %s637_s18 = smov [#allocation2]   ;;  %s589_s22 = scalar_lea.hbm %s773_s0, 2560 }
   0x2   :  { %s17_s19 = sshll.u32 %s637_s18, 4  ;;  %p590_p0 = scmp.ne.s32.totalorder %s773_s0, %s589_s22  ;;  %s18_s19 = int_to_ptr.vmem [resolvable:$true] %s17_s19 }
   0x3   :  { %p593_p1 = scmp.lt.u32.totalorder %s589_s22, %s773_s0 }
   0x5   :  { %p595_p2 = pnand %p593_p1, %p590_p0 }
   0x7   :  { %598 = shalt.err (!%p595_p2)
}
   0x8   :  { %s599_s27 = scalar_lea.vmem %s18_s19, 2560  ;;  %p604_p4 = scmp.lt.s32.totalorder %s18_s19, %s18_s19 }
   0x9   :  { %p600_p3 = scmp.ne.s32.totalorder %s18_s19, %s599_s27  ;;  %p605_p5 = scmp.lt.s32.totalorder %s599_s27, %s599_s27 }
   0xb   :  { %p606_p6 = por %p605_p5, %p604_p4 }
   0xd   :  { %p607_p7 = pnand %p606_p6, %p600_p3 }
   0xf   :  { %610 = shalt.err (!%p607_p7)
}
  0x10   :  { %s638_s28 = smov 512   ;;  %s639_s29 = smov 32  }
  0x11   :  { %23 = dma.hbm_to_vmem [thread:$0]  %s773_s0, 2560, %s18_s19, [#allocation3], %s638_s28, %s638_s28, %s639_s29  }
  0x12   :  { %633 = dma.done.wait [#allocation3], 2560  }
  0x13   :  { %634 = vsyncadd [#allocation3], 4294964736  ;;  %v640_v0 = vmov 0.0   ;;  %v641_v1 = vmov 0   ;;  %v40_v2 = vld [vmem:[#allocation2 + $0x8] sm:$0xff]  ;;  %v42_v4 = vld [vmem:[#allocation2 + $0x18] sm:$0xff] }
  0x14   :  { %173 = vmatprep.mubr.f32.mxu0 %v640_v0  ;;  %262 = vmatprep.mubr.f32.mxu1 %v640_v0  ;;  %v44_v3 = vld [vmem:[#allocation2 + $0x28] sm:$0xff]  ;;  %v46_v6 = vld [vmem:[#allocation2 + $0x38] sm:$0xff]  ;;  %v39_v7 = vld [vmem:[#allocation2] sm:$0xff]  ;;  %vm96_vm0 = vcmask 1043456   ;;  %vm83_vm1 = vcmask 293888   ;;  %vm364_vm2 = vcmask 261120  }
  0x15   :  { %587 = vset.pattern.permute.xlu0 %v641_v1  ;;  %588 = vset.pattern.permute.xlu1 %v641_v1  ;;  %v553_v5 = vpack.c.bf16 %v44_v3, %v40_v2  ;;  %v43_v8 = vld [vmem:[#allocation2 + $0x20] sm:$0xff]  ;;  %v561_v9 = vpack.c.bf16 %v46_v6, %v42_v4  ;;  %v41_v11 = vld [vmem:[#allocation2 + $0x10] sm:$0xff]  ;;  %v48_v13 = vld [vmem:[#allocation2 + $0x48] sm:$0xff]  ;;  %vm327_vm3 = vcmask 7168   ;;  %vm498_vm4 = vcmask 254976  }
  0x16   :  { %v555_v10 = vpack.c.bf16 %v43_v8, %v39_v7  ;;  %v45_v12 = vld [vmem:[#allocation2 + $0x30] sm:$0xff]  ;;  %v52_v15 = vld [vmem:[#allocation2 + $0x68] sm:$0xff]  ;;  %v50_v16 = vld [vmem:[#allocation2 + $0x58] sm:$0xff] }
  0x17   :  { %554 = vmatprep.subr.bf16.mxu0 %v553_v5  ;;  %v563_v14 = vpack.c.bf16 %v45_v12, %v41_v11  ;;  %v54_v17 = vld [vmem:[#allocation2 + $0x78] sm:$0xff]  ;;  %562 = vmatprep.subr.bf16.mxu1 %v561_v9  ;;  %v557_v18 = vpack.c.bf16 %v52_v15, %v48_v13  ;;  %v47_v20 = vld [vmem:[#allocation2 + $0x40] sm:$0xff]  ;;  %v49_v22 = vld [vmem:[#allocation2 + $0x50] sm:$0xff] }
  0x18   :  { %556 = vmatpush1.bf16.msra.mxu0 %v555_v10  ;;  %v565_v19 = vpack.c.bf16 %v54_v17, %v50_v16  ;;  %v51_v21 = vld [vmem:[#allocation2 + $0x60] sm:$0xff]  ;;  %v53_v24 = vld [vmem:[#allocation2 + $0x70] sm:$0xff]  ;;  %v56_v26 = vld [vmem:[#allocation2 + $0x88] sm:$0xf] }
  0x19   :  { %564 = vmatpush1.bf16.msra.mxu1 %v563_v14  ;;  %v559_v23 = vpack.c.bf16 %v51_v21, %v47_v20  ;;  %558 = vmatprep.subr.bf16.mxu0 %v557_v18  ;;  %v567_v25 = vpack.c.bf16 %v53_v24, %v49_v22  ;;  %v58_v27 = vld [vmem:[#allocation2 + $0x98] sm:$0xf]  ;;  %v59_v28 = vld [vmem:[%s775_s2] sm:$0xff]  ;;  %v61_v29 = vld [vmem:[%s775_s2 + $0x10] sm:$0xff] }
  0x1a   :  { %566 = vmatprep.subr.bf16.mxu1 %v565_v19  ;;  %v55_v30 = vld [vmem:[#allocation2 + $0x80] sm:$0xf]  ;;  %v57_v31 = vld [vmem:[#allocation2 + $0x90] sm:$0xf]  ;;  %65 = vperm.xlu0 %587, %v59_v28   ;;  %v60_v33 = vld [vmem:[%s775_s2 + $0x8] sm:$0xff] }
  0x1b   :  { %v35_v32 = vld [vmem:[%s774_s1] sm:$0xff]  ;;  %75 = vperm.xlu1 %588, %v61_v29   ;;  %v62_v34 = vld [vmem:[%s775_s2 + $0x18] sm:$0xff]  ;;  %v36_v35 = vld [vmem:[%s774_s1 + $0x8] sm:$0xff] }
  0x1c   :  { %560 = vmatpush1.bf16.msra.mxu0 %v559_v23  ;;  %v37_v36 = vld [vmem:[%s774_s1 + $0x10] sm:$0xff]  ;;  %v38_v37 = vld [vmem:[%s774_s1 + $0x18] sm:$0xff] }
  0x1d   :  { %568 = vmatpush1.bf16.msra.mxu1 %v567_v25  ;;  %515 = vmatprep.subr.msk.mxu0 %vm96_vm0, %v56_v26 }
  0x1e   :  { %521 = vmatprep.subr.msk.mxu1 %vm96_vm0, %v58_v27  ;;  %70 = vperm.xlu0 %587, %v60_v33  }
  0x1f   :  { %80 = vperm.xlu1 %588, %v62_v34   ;;  %v340_v34 = vld [vmem:[%s777_s4] sm:$0xff] }
  0x20   :  { %516 = vmatpush1.msk.msra.mxu0 %vm96_vm0, %v55_v30 }
  0x21   :  { %522 = vmatpush1.msk.msra.mxu1 %vm96_vm0, %v57_v31  ;;  %517 = vmatmul.mubr.msk.f32.vlgmr.msra.gmra.mrb[0].mxu0 %vm83_vm1, %v35_v32 }
  0x22   :  { %523 = vmatmul.mubr.msk.f32.vlgmr.msra.gmra.mrb[0].mxu1 %vm83_vm1, %v35_v32  ;;  %179 = vmatprep.mubr.f32.mxu0 %v640_v0 }
  0x23   :  { %268 = vmatprep.mubr.f32.mxu1 %v640_v0 }
  0x25   :  { %518 = vmatmul.mubr.msk.f32.gmra.mrb[2].mxu0 %vm83_vm1, %v36_v35 }
  0x26   :  { %524 = vmatmul.mubr.msk.f32.gmra.mrb[2].mxu1 %vm83_vm1, %v36_v35  ;;  %185 = vmatprep.mubr.f32.mxu0 %v640_v0  ;;  %v342_v35 = vld [vmem:[%s777_s4 + $0x10] sm:$0xff] }
  0x27   :  { %274 = vmatprep.mubr.f32.mxu1 %v640_v0 }
  0x29   :  { %519 = vmatmul.mubr.msk.f32.gmra.mrb[4].mxu0 %vm83_vm1, %v37_v36 }
  0x2a   :  { %525 = vmatmul.mubr.msk.f32.gmra.mrb[4].mxu1 %vm83_vm1, %v37_v36  ;;  %191 = vmatprep.mubr.f32.mxu0 %v640_v0  ;;  %v343_v36 = vld [vmem:[%s777_s4 + $0x18] sm:$0xff] }
  0x2b   :  { %280 = vmatprep.mubr.f32.mxu1 %v640_v0 }
  0x2d   :  { %520 = vmatmul.mubr.msk.f32.gmra.mrb[6].mxu0 %vm83_vm1, %v38_v37 }
  0x2e   :  { %526 = vmatmul.mubr.msk.f32.gmra.mrb[6].mxu1 %vm83_vm1, %v38_v37  ;;  %v341_v37 = vld [vmem:[%s777_s4 + $0x8] sm:$0xff] }
  0x99   :  { %v66_v38 = vpop.permute.xlu0 %65 }
  0x9a   :  { %v76_v57 = vpop.permute.xlu1 %75 }
  0x9d   :  { %v71_v49 = vpop.permute.xlu0 %70 }
  0x9e   :  { %v81_v15 = vpop.permute.xlu1 %80 }
  0xf4   :  { %v175_v39 = vpop.f32.mrb[0].mxu0 }
  0xf5   :  { %v176_v40 = vadd.f32 %v175_v39, %v66_v38  ;;  %v264_v41 = vpop.f32.mrb[0].mxu1  ;;  %v177_v42 = vpop.f32.mrb[1].mxu0  ;;  %v338_v39 = vld [vmem:[%s776_s3 + $0x10] sm:$0xff] }
  0xf6   :  { %v265_v43 = vadd.f32 %v264_v41, %v66_v38  ;;  %v178_v44 = vadd.f32 %v177_v42, %v66_v38  ;;  %v266_v45 = vpop.f32.mrb[1].mxu1  ;;  %550 = vmatprep.mubr.msk.f32.mxu1 %vm364_vm2, %v338_v39 }
  0xf7   :  { %v287_v46 = vmax.f32 %v176_v40, 0.0  ;;  %v267_v47 = vadd.f32 %v266_v45, %v66_v38  ;;  %v336_v38 = vld [vmem:[%s776_s3] sm:$0xff] }
  0xf8   :  { %v289_v48 = vmax.f32 %v265_v43, 0.0  ;;  %v288_v50 = vmax.f32 %v178_v44, 0.0  ;;  %v181_v51 = vpop.f32.mrb[2].mxu0  ;;  %547 = vmatprep.mubr.msk.f32.mxu0 %vm364_vm2, %v336_v38 }
  0xf9   :  { %v290_v52 = vmax.f32 %v267_v47, 0.0  ;;  %v182_v53 = vadd.f32 %v181_v51, %v71_v49  ;;  %v270_v54 = vpop.f32.mrb[2].mxu1  ;;  %v183_v55 = vpop.f32.mrb[3].mxu0 }
  0xfa   :  { %v271_v56 = vadd.f32 %v270_v54, %v71_v49  ;;  %v184_v58 = vadd.f32 %v183_v55, %v71_v49  ;;  %v272_v59 = vpop.f32.mrb[3].mxu1  ;;  %v303_v60 = vadd.f32 %v288_v50, %v287_v46 }
  0xfb   :  { %v291_v61 = vmax.f32 %v182_v53, 0.0  ;;  %v273_v62 = vadd.f32 %v272_v59, %v71_v49  ;;  %v315_v63 = vadd.f32 %v290_v52, %v289_v48  ;;  %v339_v59 = vld [vmem:[%s776_s3 + $0x18] sm:$0xff] }
  0xfc   :  { %v293_v0 = vmax.f32 %v271_v56, 0.0  ;;  %v292_v1 = vmax.f32 %v184_v58, 0.0  ;;  %v187_v2 = vpop.f32.mrb[4].mxu0  ;;  %304 = vadd.xlane.f32.xlu0 %v303_v60  ;;  %v337_v58 = vld [vmem:[%s776_s3 + $0x8] sm:$0xff]  ;;  %s642_s3 = smov [#allocation5]  }
  0xfd   :  { %v294_v3 = vmax.f32 %v273_v62, 0.0  ;;  %v188_v4 = vadd.f32 %v187_v2, %v76_v57  ;;  %v276_v5 = vpop.f32.mrb[4].mxu1  ;;  %v189_v6 = vpop.f32.mrb[5].mxu0  ;;  %s506_s9 = sshll.u32 %s642_s3, 4  ;;  %s507_s9 = int_to_ptr.vmem [resolvable:$true] %s506_s9 }
  0xfe   :  { %v277_v7 = vadd.f32 %v276_v5, %v76_v57  ;;  %v190_v8 = vadd.f32 %v189_v6, %v76_v57  ;;  %v278_v9 = vpop.f32.mrb[5].mxu1  ;;  %v306_v10 = vadd.f32 %v292_v1, %v291_v61  ;;  %s611_s10 = scalar_lea.vmem %s507_s9, 32  ;;  %p616_p9 = scmp.lt.s32.totalorder %s507_s9, %s507_s9 }
  0xff   :  { %v295_v11 = vmax.f32 %v188_v4, 0.0  ;;  %v279_v12 = vadd.f32 %v278_v9, %v76_v57  ;;  %v318_v13 = vadd.f32 %v294_v3, %v293_v0  ;;  %p612_p8 = scmp.ne.s32.totalorder %s507_s9, %s611_s10  ;;  %p617_p10 = scmp.lt.s32.totalorder %s611_s10, %s611_s10 }
 0x100   :  { %v297_v14 = vmax.f32 %v277_v7, 0.0  ;;  %v296_v16 = vmax.f32 %v190_v8, 0.0  ;;  %v193_v17 = vpop.f32.mrb[6].mxu0  ;;  %307 = vadd.xlane.f32.xlu1 %v306_v10  ;;  %316 = vadd.xlane.f32.xlu0 %v315_v63 }
 0x101   :  { %v298_v18 = vmax.f32 %v279_v12, 0.0  ;;  %v194_v19 = vadd.f32 %v193_v17, %v81_v15  ;;  %v282_v20 = vpop.f32.mrb[6].mxu1  ;;  %v195_v21 = vpop.f32.mrb[7].mxu0  ;;  %p618_p11 = por %p617_p10, %p616_p9 }
 0x102   :  { %v283_v22 = vadd.f32 %v282_v20, %v81_v15  ;;  %v196_v23 = vadd.f32 %v195_v21, %v81_v15  ;;  %v284_v24 = vpop.f32.mrb[7].mxu1  ;;  %v309_v25 = vadd.f32 %v296_v16, %v295_v11 }
 0x103   :  { %v299_v26 = vmax.f32 %v194_v19, 0.0  ;;  %v285_v27 = vadd.f32 %v284_v24, %v81_v15  ;;  %v321_v28 = vadd.f32 %v298_v18, %v297_v14  ;;  %p619_p12 = pnand %p618_p11, %p612_p8 }
 0x104   :  { %v301_v29 = vmax.f32 %v283_v22, 0.0  ;;  %v300_v30 = vmax.f32 %v196_v23, 0.0  ;;  %310 = vadd.xlane.f32.xlu1 %v309_v25  ;;  %319 = vadd.xlane.f32.xlu0 %v318_v13 }
 0x105   :  { %v302_v31 = vmax.f32 %v285_v27, 0.0 }
 0x106   :  { %v312_v32 = vadd.f32 %v300_v30, %v299_v26 }
 0x107   :  { %v324_v33 = vadd.f32 %v302_v31, %v301_v29 }
 0x108   :  { %322 = vadd.xlane.f32.xlu1 %v321_v28  ;;  %313 = vadd.xlane.f32.xlu0 %v312_v32 }
 0x10c   :  { %325 = vadd.xlane.f32.xlu0 %v324_v33 }
 0x119   :  { %346 = vperm.xlu1 %588, %v340_v34  }
 0x11d   :  { %356 = vperm.xlu1 %588, %v342_v35  }
 0x121   :  { %361 = vperm.xlu1 %588, %v343_v36  }
 0x122   :  { %351 = vperm.xlu0 %587, %v341_v37  }
 0x189   :  { %v305_v40 = vpop.xlane.xlu0 %304 }
 0x18d   :  { %v308_v41 = vpop.xlane.xlu1 %307  ;;  %v317_v42 = vpop.xlane.xlu0 %316 }
 0x18e   :  { %v328_v43 = vsel %vm327_vm3, %v305_v40, %v317_v42 }
 0x18f   :  { %v332_v47 = vmul.f32 0.00390625, %v328_v43 }
 0x191   :  { %v311_v44 = vpop.xlane.xlu1 %310  ;;  %v320_v45 = vpop.xlane.xlu0 %319 }
 0x192   :  { %v329_v46 = vsel %vm327_vm3, %v308_v41, %v320_v45 }
 0x193   :  { %v333_v48 = vmul.f32 0.00390625, %v329_v46 }
 0x195   :  { %v569_v49 = vpack.c.bf16 %v333_v48, %v332_v47  ;;  %v323_v50 = vpop.xlane.xlu1 %322  ;;  %v314_v51 = vpop.xlane.xlu0 %313 }
 0x196   :  { %v330_v52 = vsel %vm327_vm3, %v311_v44, %v323_v50 }
 0x197   :  { %570 = vmatprep.subr.bf16.mxu0 %v569_v49  ;;  %577 = vmatprep.subr.bf16.mxu1 %v569_v49  ;;  %v334_v55 = vmul.f32 0.00390625, %v330_v52 }
 0x198   :  { %572 = vmatpush3.bf16.msra.mxu0 %v569_v49  ;;  %579 = vmatpush3.bf16.msra.mxu1 %v569_v49 }
 0x199   :  { %v326_v53 = vpop.xlane.xlu0 %325  ;;  %v347_v60 = vpop.permute.xlu1 %346 }
 0x19a   :  { %v331_v54 = vsel %vm327_vm3, %v314_v51, %v326_v53 }
 0x19b   :  { %v335_v56 = vmul.f32 0.00390625, %v331_v54 }
 0x19d   :  { %v573_v57 = vpack.c.bf16 %v335_v56, %v334_v55  ;;  %v357_v5 = vpop.permute.xlu1 %356 }
 0x19f   :  { %574 = vmatprep.subr.bf16.mxu0 %v573_v57  ;;  %578 = vmatprep.subr.bf16.mxu1 %v573_v57 }
 0x1a0   :  { %576 = vmatpush3.bf16.msra.mxu0 %v573_v57  ;;  %580 = vmatpush3.bf16.msra.mxu1 %v573_v57 }
 0x1a1   :  { %v352_v2 = vpop.permute.xlu0 %351  ;;  %v362_v8 = vpop.permute.xlu1 %361 }
 0x1a3   :  { %548 = vmatmul.mubr.msk.f32.vlgmr.msra.gmra.mrb[8].mxu0 %vm364_vm2, %v337_v58  ;;  %551 = vmatmul.mubr.msk.f32.vlgmr.msra.gmra.mrb[8].mxu1 %vm364_vm2, %v339_v59 }
 0x276   :  { %v549_v61 = vpop.f32.mrb[8].mxu0  ;;  %v552_v62 = vpop.f32.mrb[8].mxu1 }
 0x277   :  { %v443_v63 = vpop.f32.mrb[9].mxu0  ;;  %v453_v0 = vpop.f32.mrb[9].mxu1  ;;  %v449_v3 = vadd.f32 %v549_v61, %v352_v2  ;;  %v459_v9 = vadd.f32 %v552_v62, %v362_v8 }
 0x278   :  { %v444_v1 = vadd.f32 %v443_v63, %v347_v60  ;;  %v454_v7 = vadd.f32 %v453_v0, %v357_v5 }
 0x279   :  { %v463_v6 = vmax.f32 %v449_v3, 0.0  ;;  %v465_v11 = vmax.f32 %v459_v9, 0.0 }
 0x27a   :  { %v462_v4 = vmax.f32 %v444_v1, 0.0  ;;  %v464_v10 = vmax.f32 %v454_v7, 0.0 }
 0x27c   :  { %466 = vxpose.xlu0.b32.start [1/4] (short) (narrow) %v462_v4, 8 }
 0x280   :  { %467 = vxpose.xlu0.b32.cont [2/4] (short) (narrow) %v463_v6, 8 }
 0x284   :  { %468 = vxpose.xlu0.b32.cont [3/4] (short) (narrow) %v464_v10, 8 }
 0x288   :  { %469 = vxpose.xlu0.b32.end [4/4] (short) (narrow) %v465_v11, 8 }
 0x2fc   :  { %v482_v12 = vpop.trf.xlu0 }
 0x2fd   :  { %499 = vst.msk [vmem:[#allocation5] sm:$0x3] %vm498_vm4, %v482_v12 }
 0x2fe   :  { %622 = shalt.err (!%p619_p12)
}
 0x2ff   :  { %s623_s13 = scalar_lea.hbm %s778_s5, 32 }
 0x300   :  { %p624_p13 = scmp.ne.s32.totalorder %s778_s5, %s623_s13  ;;  %p627_p0 = scmp.lt.u32.totalorder %s623_s13, %s778_s5 }
 0x302   :  { %p629_p1 = pnand %p627_p0, %p624_p13 }
 0x304   :  { %632 = shalt.err (!%p629_p1)
}
 0x305   :  { %509 = dma.vmem_to_hbm [thread:$0]  %s507_s9, 32, %s778_s5, [#allocation4]  }
 0x306   :  { %635 = dma.done.wait [#allocation4], 32  }
 0x307   :  { %636 = vsyncadd [#allocation4], 4294967264 }
 0x308   :  { %513 = vsyncpa [#allocation3], 1 }
 0x309   :  { %514 = vsyncpa [#allocation4], 1 }

</bundles_post_ra>
